<compile_context>
chip_gen: v7x
topology: tpu7x:2x2x1
jax: 0.10.0
libtpu: 0.0.40
codegen_flags: <defaults>
</compile_context>

<pallas_src>
import functools

import jax
import jax.numpy as jnp
from jax.experimental import pallas as pl
from jax.experimental.pallas import tpu as pltpu


def _round_up(n, m):
    return ((n + m - 1) // m) * m


def invdyn_kernel(x_ref, w0_ref, b0_ref, w1_ref, b1_ref, w2_ref, b2_ref, o_ref):
    # All operands f32; f32 accumulation on the MXU; bias-add + tanh on VPU/EUP.
    x = x_ref[...]                                                        # [bb, in_dim]
    h0 = jnp.tanh(jnp.dot(x, w0_ref[...],
                          preferred_element_type=jnp.float32) + b0_ref[...])
    h1 = jnp.tanh(jnp.dot(h0, w1_ref[...],
                          preferred_element_type=jnp.float32) + b1_ref[...])
    out = jnp.dot(h1, w2_ref[...],
                  preferred_element_type=jnp.float32) + b2_ref[...]
    # Output block is lane-dense (last dim padded to a multiple of 128) -> unmasked vst.
    o_ref[...] = out.astype(o_ref.dtype)


@functools.partial(jax.jit, static_argnames=("block_b",))
def invdyn_mlp_forward(x, params, *, block_b=None):
    """x: [B, 2*obs_dim] f32. params: dict of (w0,b0,w1,b1,w2,b2) in f32.

    block_b=None -> single grid step (best on v5e/v6e, one TensorCore).
    On v7x, pass block_b = B // 2 for exactly two "parallel" steps (two TensorCores).
    """
    w0 = params["w0"].astype(jnp.float32)
    b0 = params["b0"].astype(jnp.float32)
    w1 = params["w1"].astype(jnp.float32)
    b1 = params["b1"].astype(jnp.float32)
    w2 = params["w2"].astype(jnp.float32)
    b2 = params["b2"].astype(jnp.float32)

    B, in_dim = x.shape
    mlp_w = w0.shape[1]
    act_dim = w2.shape[1]

    # --- Lane-dense padding of hidden and output widths (zero columns / rows are exact).
    h_pad = _round_up(mlp_w, 128)
    n_pad = _round_up(act_dim, 128)
    if h_pad != mlp_w:
        dh = h_pad - mlp_w
        w0 = jnp.pad(w0, ((0, 0), (0, dh)))
        b0 = jnp.pad(b0, ((0, 0), (0, dh)))
        w1 = jnp.pad(w1, ((0, dh), (0, dh)))
        b1 = jnp.pad(b1, ((0, 0), (0, dh)))
        w2 = jnp.pad(w2, ((0, dh), (0, 0)))
    if n_pad != act_dim:
        dn = n_pad - act_dim
        w2 = jnp.pad(w2, ((0, 0), (0, dn)))
        b2 = jnp.pad(b2, ((0, 0), (0, dn)))

    # --- Grid: as few steps as possible (kernel is per-step-overhead bound).
    x_in = x.astype(jnp.float32)
    if block_b is None:
        bb = B
        n_steps = 1
        B_pad = B
    else:
        bb = int(block_b)
        n_steps = pl.cdiv(B, bb)
        B_pad = n_steps * bb
        if B_pad != B:
            x_in = jnp.pad(x_in, ((0, B_pad - B), (0, 0)))

    def batch_map(i):
        return (i, 0)

    def whole_map(i):
        return (0, 0)

    out_padded = pl.pallas_call(
        invdyn_kernel,
        out_shape=jax.ShapeDtypeStruct((B_pad, n_pad), jnp.float32),
        grid_spec=pltpu.PrefetchScalarGridSpec(
            num_scalar_prefetch=0,
            grid=(n_steps,),
            in_specs=[
                pl.BlockSpec((bb, in_dim), batch_map),      # x tile
                pl.BlockSpec((in_dim, h_pad), whole_map),   # w0 (resident)
                pl.BlockSpec((1, h_pad), whole_map),        # b0 (resident)
                pl.BlockSpec((h_pad, h_pad), whole_map),    # w1 (resident)
                pl.BlockSpec((1, h_pad), whole_map),        # b1 (resident)
                pl.BlockSpec((h_pad, n_pad), whole_map),    # w2 (resident)
                pl.BlockSpec((1, n_pad), whole_map),        # b2 (resident)
            ],
            out_specs=pl.BlockSpec((bb, n_pad), batch_map),
        ),
        compiler_params=pltpu.CompilerParams(
            dimension_semantics=("parallel",)
        ),
    )(x_in, w0, b0, w1, b1, w2, b2)

    # Slice back to the real batch and action dims.
    return out_padded[:B, :act_dim]


def init_params(key, obs_dim, act_dim, mlp_w):
    """Deterministic init mirroring nn.Linear (U[-1/sqrt(fan_in), 1/sqrt(fan_in)]),
    with fc2 weight & bias scaled by 0.01 as in the PyTorch module."""
    in_dim = obs_dim * 2
    k = jax.random.split(key, 6)

    def lin(kw, kb, fan_in, fan_out):
        bound = 1.0 / jnp.sqrt(jnp.float32(fan_in))
        w = jax.random.uniform(kw, (fan_in, fan_out), jnp.float32, -bound, bound)
        b = jax.random.uniform(kb, (1, fan_out), jnp.float32, -bound, bound)
        return w, b

    w0, b0 = lin(k[0], k[1], in_dim, mlp_w)
    w1, b1 = lin(k[2], k[3], mlp_w, mlp_w)
    w2, b2 = lin(k[4], k[5], mlp_w, act_dim)
    w2 = w2 * 0.01
    b2 = b2 * 0.01
    return dict(w0=w0, b0=b0, w1=w1, b1=b1, w2=w2, b2=b2)


def reference_forward(x, p):
    # Pure f32 reference (matches the PyTorch module semantics).
    h0 = jnp.tanh(x @ p["w0"] + p["b0"])
    h1 = jnp.tanh(h0 @ p["w1"] + p["b1"])
    return h1 @ p["w2"] + p["b2"]


if __name__ == "__main__":
    # Shapes consistent with a typical mujoco env_spec.  block_b=None -> a single grid
    # step (optimal on v5e/v6e).  On v7x, use block_b=batch//2 for 2 parallel steps.
    obs_dim = 11
    act_dim = 3
    mlp_w = 64
    batch = 256

    key = jax.random.PRNGKey(0)
    kx, kp = jax.random.split(key)
    x = jax.random.normal(kx, (batch, obs_dim * 2), jnp.float32)
    params = init_params(kp, obs_dim, act_dim, mlp_w)

    out = invdyn_mlp_forward(x, params, block_b=None)
    out = jax.block_until_ready(out)

    ref = reference_forward(x, params)
    assert out.shape == (batch, act_dim)
    # All-f32 path: tight tolerance vs the f32 reference.
    assert jnp.allclose(out, ref, atol=1e-4, rtol=1e-4), (
        "mismatch vs reference: max abs err = "
        f"{float(jnp.max(jnp.abs(out - ref)))}"
    )

    print("KERNEL_OK")
</pallas_src>

<mosaic_0001>
module attributes {stable_mosaic.version = 11 : i64} {
  func.func @invdyn_kernel(%arg0: i32, %arg1: memref<256x22xf32, #tpu.memory_space<vmem>>, %arg2: memref<22x128xf32, #tpu.memory_space<vmem>>, %arg3: memref<1x128xf32, #tpu.memory_space<vmem>>, %arg4: memref<128x128xf32, #tpu.memory_space<vmem>>, %arg5: memref<1x128xf32, #tpu.memory_space<vmem>>, %arg6: memref<128x128xf32, #tpu.memory_space<vmem>>, %arg7: memref<1x128xf32, #tpu.memory_space<vmem>>, %arg8: memref<256x128xf32, #tpu.memory_space<vmem>>) attributes {dimension_semantics = [#tpu.dimension_semantics<parallel>], iteration_bounds = array<i64: 1>, scalar_prefetch = 0 : i64, scratch_operands = 0 : i64, tpu.core_type = #tpu.core_type<tc>, window_params = [{transform_indices = @transform_0, window_bounds = array<i64: 256, 22>}, {pipeline_mode = #tpu.pipeline_mode<synchronous>, transform_indices = @transform_1, window_bounds = array<i64: 22, 128>}, {pipeline_mode = #tpu.pipeline_mode<synchronous>, transform_indices = @transform_2, window_bounds = array<i64: 1, 128>}, {pipeline_mode = #tpu.pipeline_mode<synchronous>, transform_indices = @transform_3, window_bounds = array<i64: 128, 128>}, {pipeline_mode = #tpu.pipeline_mode<synchronous>, transform_indices = @transform_4, window_bounds = array<i64: 1, 128>}, {pipeline_mode = #tpu.pipeline_mode<synchronous>, transform_indices = @transform_5, window_bounds = array<i64: 128, 128>}, {pipeline_mode = #tpu.pipeline_mode<synchronous>, transform_indices = @transform_6, window_bounds = array<i64: 1, 128>}, {transform_indices = @transform_7, window_bounds = array<i64: 256, 128>}]} {
    %c0 = arith.constant 0 : index
    %c0_0 = arith.constant 0 : index
    %0 = vector.load %arg1[%c0, %c0_0] : memref<256x22xf32, #tpu.memory_space<vmem>>, vector<256x22xf32>
    %c0_1 = arith.constant 0 : index
    %c0_2 = arith.constant 0 : index
    %1 = vector.load %arg2[%c0_1, %c0_2] : memref<22x128xf32, #tpu.memory_space<vmem>>, vector<22x128xf32>
    %cst = arith.constant dense<0.000000e+00> : vector<256x128xf32>
    %2 = tpu.matmul %0, %1, %cst {dimension_numbers = #tpu.dot_dimension_numbers<[1], [0], [0], [1], [0, 0, 1, 1], [], []>} : vector<256x22xf32>, vector<22x128xf32>, vector<256x128xf32> -> vector<256x128xf32>
    %c0_3 = arith.constant 0 : index
    %c0_4 = arith.constant 0 : index
    %3 = vector.load %arg3[%c0_3, %c0_4] : memref<1x128xf32, #tpu.memory_space<vmem>>, vector<1x128xf32>
    %4 = vector.broadcast %3 : vector<1x128xf32> to vector<256x128xf32>
    %5 = arith.addf %2, %4 : vector<256x128xf32>
    %6 = math.tanh %5 : vector<256x128xf32>
    %c0_5 = arith.constant 0 : index
    %c0_6 = arith.constant 0 : index
    %7 = vector.load %arg4[%c0_5, %c0_6] : memref<128x128xf32, #tpu.memory_space<vmem>>, vector<128x128xf32>
    %cst_7 = arith.constant dense<0.000000e+00> : vector<256x128xf32>
    %8 = tpu.matmul %6, %7, %cst_7 {dimension_numbers = #tpu.dot_dimension_numbers<[1], [0], [0], [1], [0, 0, 1, 1], [], []>} : vector<256x128xf32>, vector<128x128xf32>, vector<256x128xf32> -> vector<256x128xf32>
    %c0_8 = arith.constant 0 : index
    %c0_9 = arith.constant 0 : index
    %9 = vector.load %arg5[%c0_8, %c0_9] : memref<1x128xf32, #tpu.memory_space<vmem>>, vector<1x128xf32>
    %10 = vector.broadcast %9 : vector<1x128xf32> to vector<256x128xf32>
    %11 = arith.addf %8, %10 : vector<256x128xf32>
    %12 = math.tanh %11 : vector<256x128xf32>
    %c0_10 = arith.constant 0 : index
    %c0_11 = arith.constant 0 : index
    %13 = vector.load %arg6[%c0_10, %c0_11] : memref<128x128xf32, #tpu.memory_space<vmem>>, vector<128x128xf32>
    %cst_12 = arith.constant dense<0.000000e+00> : vector<256x128xf32>
    %14 = tpu.matmul %12, %13, %cst_12 {dimension_numbers = #tpu.dot_dimension_numbers<[1], [0], [0], [1], [0, 0, 1, 1], [], []>} : vector<256x128xf32>, vector<128x128xf32>, vector<256x128xf32> -> vector<256x128xf32>
    %c0_13 = arith.constant 0 : index
    %c0_14 = arith.constant 0 : index
    %15 = vector.load %arg7[%c0_13, %c0_14] : memref<1x128xf32, #tpu.memory_space<vmem>>, vector<1x128xf32>
    %16 = vector.broadcast %15 : vector<1x128xf32> to vector<256x128xf32>
    %17 = arith.addf %14, %16 : vector<256x128xf32>
    %c0_15 = arith.constant 0 : index
    %c0_16 = arith.constant 0 : index
    %18 = vector.load %arg8[%c0_15, %c0_16] : memref<256x128xf32, #tpu.memory_space<vmem>>, vector<256x128xf32>
    tpu.vector_store %arg8[%c0_15, %c0_16], %17 {strides = array<i32>} : memref<256x128xf32, #tpu.memory_space<vmem>>, vector<256x128xf32>,
    return
  }
  func.func @transform_0(%arg0: i32) -> (i32, i32) {
    %c0_i32 = arith.constant 0 : i32
    %c0_i32_0 = arith.constant 0 : i32
    return %arg0, %c0_i32 : i32, i32
  }
  func.func @transform_1(%arg0: i32) -> (i32, i32) {
    %c0_i32 = arith.constant 0 : i32
    %c0_i32_0 = arith.constant 0 : i32
    %c0_i32_1 = arith.constant 0 : i32
    return %c0_i32, %c0_i32_0 : i32, i32
  }
  func.func @transform_2(%arg0: i32) -> (i32, i32) {
    %c0_i32 = arith.constant 0 : i32
    %c0_i32_0 = arith.constant 0 : i32
    %c0_i32_1 = arith.constant 0 : i32
    return %c0_i32, %c0_i32_0 : i32, i32
  }
  func.func @transform_3(%arg0: i32) -> (i32, i32) {
    %c0_i32 = arith.constant 0 : i32
    %c0_i32_0 = arith.constant 0 : i32
    %c0_i32_1 = arith.constant 0 : i32
    return %c0_i32, %c0_i32_0 : i32, i32
  }
  func.func @transform_4(%arg0: i32) -> (i32, i32) {
    %c0_i32 = arith.constant 0 : i32
    %c0_i32_0 = arith.constant 0 : i32
    %c0_i32_1 = arith.constant 0 : i32
    return %c0_i32, %c0_i32_0 : i32, i32
  }
  func.func @transform_5(%arg0: i32) -> (i32, i32) {
    %c0_i32 = arith.constant 0 : i32
    %c0_i32_0 = arith.constant 0 : i32
    %c0_i32_1 = arith.constant 0 : i32
    return %c0_i32, %c0_i32_0 : i32, i32
  }
  func.func @transform_6(%arg0: i32) -> (i32, i32) {
    %c0_i32 = arith.constant 0 : i32
    %c0_i32_0 = arith.constant 0 : i32
    %c0_i32_1 = arith.constant 0 : i32
    return %c0_i32, %c0_i32_0 : i32, i32
  }
  func.func @transform_7(%arg0: i32) -> (i32, i32) {
    %c0_i32 = arith.constant 0 : i32
    %c0_i32_0 = arith.constant 0 : i32
    return %arg0, %c0_i32 : i32, i32
  }
}

</mosaic_0001>

<bundles_post_ra>
// kernel: invdyn_mlp_forward.1
= control target key start
LH: loop header
LB: loop body
LE: loop exit
PB: predicated region body
PF: predicated region fallthrough
CT: control target
= control target key end

     0   :  { %vm68_vm0 = vcmask 179200   ;;  %vm165_vm1 = vcmask 1045504   ;;  %s2093_s1 = inlined_call_operand.vmem [shape: f32[22,128], index: 1, kind: input, shape index: {}]   ;;  %s2094_s0 = inlined_call_operand.vmem [shape: f32[256,22], index: 0, kind: input, shape index: {}]   ;;  %s2095_s3 = inlined_call_operand.vmem [shape: f32[128,128], index: 3, kind: input, shape index: {}]   ;;  %s2096_s5 = inlined_call_operand.vmem [shape: f32[128,128], index: 5, kind: input, shape index: {}]   ;;  %s2097_s2 = inlined_call_operand.vmem [shape: f32[1,128], index: 2, kind: input, shape index: {}]   ;;  %s2098_s4 = inlined_call_operand.vmem [shape: f32[1,128], index: 4, kind: input, shape index: {}]   ;;  %s2099_s6 = inlined_call_operand.vmem [shape: f32[1,128], index: 6, kind: input, shape index: {}]   ;;  %s2100_s7 = inlined_call_operand.vmem [shape: f32[256,128], index: 7, kind: output, shape index: {}]  }
   0x1   :  { %v58_v0 = vld [vmem:[%s2093_s1] sm:$0xff]  ;;  %v59_v1 = vld [vmem:[%s2093_s1 + $0x8] sm:$0xff]  ;;  %v60_v4 = vld [vmem:[%s2093_s1 + $0x10] sm:$0x3f] }
   0x2   :  { %v1371_v2 = vpack.c.bf16 %v59_v1, %v58_v0  ;;  %v26_v3 = vld [vmem:[%s2094_s0] sm:$0xff]  ;;  %v27_v5 = vld [vmem:[%s2094_s0 + $0x8] sm:$0xff]  ;;  %v28_v8 = vld [vmem:[%s2094_s0 + $0x10] sm:$0xff] }
   0x3   :  { %1163 = vmatprep.mubr.msk.f32.mxu0 %vm68_vm0, %v26_v3  ;;  %v42_v6 = vld [vmem:[%s2094_s0 + $0x80] sm:$0xff]  ;;  %v43_v7 = vld [vmem:[%s2094_s0 + $0x88] sm:$0xff]  ;;  %v44_v9 = vld [vmem:[%s2094_s0 + $0x90] sm:$0xff] }
   0x4   :  { %1372 = vmatprep.subr.bf16.mxu0 %v1371_v2  ;;  %1439 = vmatprep.subr.bf16.mxu1 %v1371_v2  ;;  %v29_v10 = vld [vmem:[%s2094_s0 + $0x18] sm:$0xff]  ;;  %v30_v12 = vld [vmem:[%s2094_s0 + $0x20] sm:$0xff]  ;;  %v427_v15 = vld [vmem:[%s2095_s3 + $0x8] sm:$0xff] }
   0x5   :  { %1374 = vmatpush3.bf16.msra.mxu0 %v1371_v2  ;;  %1441 = vmatpush3.bf16.msra.mxu1 %v1371_v2  ;;  %v45_v11 = vld [vmem:[%s2094_s0 + $0x98] sm:$0xff]  ;;  %v46_v13 = vld [vmem:[%s2094_s0 + $0xa0] sm:$0xff]  ;;  %v428_v16 = vld [vmem:[%s2095_s3 + $0x10] sm:$0xff] }
   0x6   :  { %1161 = vmatprep.subr.msk.mxu0 %vm165_vm1, %v60_v4  ;;  %1440 = vmatprep.subr.msk.mxu1 %vm165_vm1, %v60_v4  ;;  %v426_v14 = vld [vmem:[%s2095_s3] sm:$0xff]  ;;  %v429_v17 = vld [vmem:[%s2095_s3 + $0x18] sm:$0xff]  ;;  %v31_v19 = vld [vmem:[%s2094_s0 + $0x28] sm:$0xff] }
   0x7   :  { %1187 = vmatprep.mubr.msk.f32.mxu1 %vm68_vm0, %v42_v6  ;;  %v1375_v18 = vpack.c.bf16 %v427_v15, %v426_v14  ;;  %v47_v20 = vld [vmem:[%s2094_s0 + $0xa8] sm:$0xff]  ;;  %v32_v21 = vld [vmem:[%s2094_s0 + $0x30] sm:$0xff]  ;;  %v1379_v23 = vpack.c.bf16 %v429_v17, %v428_v16  ;;  %v430_v24 = vld [vmem:[%s2095_s3 + $0x20] sm:$0xff] }
   0x8   :  { %v48_v22 = vld [vmem:[%s2094_s0 + $0xb0] sm:$0xff]  ;;  %v431_v25 = vld [vmem:[%s2095_s3 + $0x28] sm:$0xff]  ;;  %v33_v26 = vld [vmem:[%s2094_s0 + $0x38] sm:$0xff] }
   0x9   :  { %1162 = vmatpush3.msk.msra.mxu0 %vm165_vm1, %v60_v4  ;;  %1442 = vmatpush3.msk.msra.mxu1 %vm165_vm1, %v60_v4  ;;  %v49_v27 = vld [vmem:[%s2094_s0 + $0xb8] sm:$0xff]  ;;  %v34_v28 = vld [vmem:[%s2094_s0 + $0x40] sm:$0xff]  ;;  %v1383_v30 = vpack.c.bf16 %v431_v25, %v430_v24  ;;  %v432_v31 = vld [vmem:[%s2095_s3 + $0x30] sm:$0xff] }
   0xa   :  { %1164 = vmatmul.mubr.msk.f32.vlgmr.msra.gmra.mrb[0].mxu0 %vm68_vm0, %v27_v5  ;;  %1188 = vmatmul.mubr.msk.f32.vlgmr.msra.gmra.mrb[0].mxu1 %vm68_vm0, %v43_v7  ;;  %v50_v29 = vld [vmem:[%s2094_s0 + $0xc0] sm:$0xff]  ;;  %v433_v32 = vld [vmem:[%s2095_s3 + $0x38] sm:$0xff]  ;;  %v35_v33 = vld [vmem:[%s2094_s0 + $0x48] sm:$0xff] }
   0xb   :  { %1166 = vmatprep.mubr.msk.f32.mxu0 %vm68_vm0, %v28_v8  ;;  %1190 = vmatprep.mubr.msk.f32.mxu1 %vm68_vm0, %v44_v9  ;;  %v51_v34 = vld [vmem:[%s2094_s0 + $0xc8] sm:$0xff]  ;;  %v36_v35 = vld [vmem:[%s2094_s0 + $0x50] sm:$0xff]  ;;  %v1387_v37 = vpack.c.bf16 %v433_v32, %v432_v31  ;;  %v434_v38 = vld [vmem:[%s2095_s3 + $0x40] sm:$0xff] }
   0xc   :  { %1376 = vmatprep.subr.bf16.mxu1 %v1375_v18  ;;  %v52_v36 = vld [vmem:[%s2094_s0 + $0xd0] sm:$0xff]  ;;  %v435_v39 = vld [vmem:[%s2095_s3 + $0x48] sm:$0xff]  ;;  %v37_v40 = vld [vmem:[%s2094_s0 + $0x58] sm:$0xff] }
   0xd   :  { %1378 = vmatpush3.bf16.msra.mxu1 %v1375_v18  ;;  %v53_v41 = vld [vmem:[%s2094_s0 + $0xd8] sm:$0xff]  ;;  %v38_v42 = vld [vmem:[%s2094_s0 + $0x60] sm:$0xff]  ;;  %v1391_v44 = vpack.c.bf16 %v435_v39, %v434_v38  ;;  %v39_v45 = vld [vmem:[%s2094_s0 + $0x68] sm:$0xff] }
   0xe   :  { %1167 = vmatmul.mubr.msk.f32.gmra.mrb[2].mxu0 %vm68_vm0, %v29_v10  ;;  %1191 = vmatmul.mubr.msk.f32.gmra.mrb[2].mxu1 %vm68_vm0, %v45_v11  ;;  %v54_v43 = vld [vmem:[%s2094_s0 + $0xe0] sm:$0xff]  ;;  %v55_v46 = vld [vmem:[%s2094_s0 + $0xe8] sm:$0xff]  ;;  %v40_v47 = vld [vmem:[%s2094_s0 + $0x70] sm:$0xff] }
   0xf   :  { %1169 = vmatprep.mubr.msk.f32.mxu0 %vm68_vm0, %v30_v12  ;;  %1193 = vmatprep.mubr.msk.f32.mxu1 %vm68_vm0, %v46_v13  ;;  %v56_v48 = vld [vmem:[%s2094_s0 + $0xf0] sm:$0xff]  ;;  %v41_v49 = vld [vmem:[%s2094_s0 + $0x78] sm:$0xff]  ;;  %v438_v54 = vld [vmem:[%s2095_s3 + $0x60] sm:$0xff] }
  0x10   :  { %1380 = vmatprep.subr.bf16.mxu1 %v1379_v23  ;;  %v57_v50 = vld [vmem:[%s2094_s0 + $0xf8] sm:$0xff]  ;;  %v436_v51 = vld [vmem:[%s2095_s3 + $0x50] sm:$0xff]  ;;  %v439_v55 = vld [vmem:[%s2095_s3 + $0x68] sm:$0xff] }
  0x11   :  { %1382 = vmatpush3.bf16.msra.mxu1 %v1379_v23  ;;  %v437_v52 = vld [vmem:[%s2095_s3 + $0x58] sm:$0xff]  ;;  %v1399_v56 = vpack.c.bf16 %v439_v55, %v438_v54  ;;  %v440_v57 = vld [vmem:[%s2095_s3 + $0x70] sm:$0xff]  ;;  %v706_v60 = vld [vmem:[%s2096_s5] sm:$0xff] }
  0x12   :  { %1170 = vmatmul.mubr.msk.f32.gmra.mrb[4].mxu0 %vm68_vm0, %v31_v19  ;;  %1194 = vmatmul.mubr.msk.f32.gmra.mrb[4].mxu1 %vm68_vm0, %v47_v20  ;;  %v1395_v53 = vpack.c.bf16 %v437_v52, %v436_v51  ;;  %v441_v58 = vld [vmem:[%s2095_s3 + $0x78] sm:$0xff]  ;;  %v707_v61 = vld [vmem:[%s2096_s5 + $0x8] sm:$0xff]  ;;  %v708_v62 = vld [vmem:[%s2096_s5 + $0x10] sm:$0xff] }
  0x13   :  { %1172 = vmatprep.mubr.msk.f32.mxu0 %vm68_vm0, %v32_v21  ;;  %1196 = vmatprep.mubr.msk.f32.mxu1 %vm68_vm0, %v48_v22  ;;  %v1403_v59 = vpack.c.bf16 %v441_v58, %v440_v57  ;;  %v1407_v63 = vpack.c.bf16 %v707_v61, %v706_v60  ;;  %v709_v0 = vld [vmem:[%s2096_s5 + $0x18] sm:$0xff]  ;;  %v710_v2 = vld [vmem:[%s2096_s5 + $0x20] sm:$0xff]  ;;  %v711_v3 = vld [vmem:[%s2096_s5 + $0x28] sm:$0xff] }
  0x14   :  { %1384 = vmatprep.subr.bf16.mxu1 %v1383_v30  ;;  %v1411_v1 = vpack.c.bf16 %v709_v0, %v708_v62  ;;  %v1415_v4 = vpack.c.bf16 %v711_v3, %v710_v2  ;;  %v712_v5 = vld [vmem:[%s2096_s5 + $0x30] sm:$0xff]  ;;  %v713_v6 = vld [vmem:[%s2096_s5 + $0x38] sm:$0xff]  ;;  %v714_v8 = vld [vmem:[%s2096_s5 + $0x40] sm:$0xff] }
  0x15   :  { %1386 = vmatpush3.bf16.msra.mxu1 %v1383_v30  ;;  %1408 = vmatprep.subr.bf16.mxu0 %v1407_v63  ;;  %v1419_v7 = vpack.c.bf16 %v713_v6, %v712_v5  ;;  %v715_v9 = vld [vmem:[%s2096_s5 + $0x48] sm:$0xff]  ;;  %v1829_v11 = vld [vmem:[%s2097_s2] ss:$0 sm:$0xff] }
  0x16   :  { %1173 = vmatmul.mubr.msk.f32.gmra.mrb[6].mxu0 %vm68_vm0, %v33_v26  ;;  %1197 = vmatmul.mubr.msk.f32.gmra.mrb[6].mxu1 %vm68_vm0, %v49_v27  ;;  %v1423_v10 = vpack.c.bf16 %v715_v9, %v714_v8 }
  0x17   :  { %1175 = vmatprep.mubr.msk.f32.mxu0 %vm68_vm0, %v34_v28  ;;  %1199 = vmatprep.mubr.msk.f32.mxu1 %vm68_vm0, %v50_v29 }
  0x18   :  { %1388 = vmatprep.subr.bf16.mxu1 %v1387_v37  ;;  %1410 = vmatpush3.bf16.msra.mxu0 %v1407_v63 }
  0x19   :  { %1390 = vmatpush3.bf16.msra.mxu1 %v1387_v37  ;;  %1412 = vmatprep.subr.bf16.mxu0 %v1411_v1 }
  0x1a   :  { %1176 = vmatmul.mubr.msk.f32.gmra.mrb[8].mxu0 %vm68_vm0, %v35_v33  ;;  %1200 = vmatmul.mubr.msk.f32.gmra.mrb[8].mxu1 %vm68_vm0, %v51_v34 }
  0x1b   :  { %1178 = vmatprep.mubr.msk.f32.mxu0 %vm68_vm0, %v36_v35  ;;  %1202 = vmatprep.mubr.msk.f32.mxu1 %vm68_vm0, %v52_v36 }
  0x1c   :  { %1392 = vmatprep.subr.bf16.mxu1 %v1391_v44  ;;  %1414 = vmatpush3.bf16.msra.mxu0 %v1411_v1 }
  0x1d   :  { %1394 = vmatpush3.bf16.msra.mxu1 %v1391_v44  ;;  %1416 = vmatprep.subr.bf16.mxu0 %v1415_v4 }
  0x1e   :  { %1179 = vmatmul.mubr.msk.f32.gmra.mrb[10].mxu0 %vm68_vm0, %v37_v40  ;;  %1203 = vmatmul.mubr.msk.f32.gmra.mrb[10].mxu1 %vm68_vm0, %v53_v41 }
  0x1f   :  { %1181 = vmatprep.mubr.msk.f32.mxu0 %vm68_vm0, %v38_v42  ;;  %1205 = vmatprep.mubr.msk.f32.mxu1 %vm68_vm0, %v54_v43 }
  0x20   :  { %1396 = vmatprep.subr.bf16.mxu1 %v1395_v53  ;;  %1418 = vmatpush3.bf16.msra.mxu0 %v1415_v4 }
  0x21   :  { %1398 = vmatpush3.bf16.msra.mxu1 %v1395_v53  ;;  %1420 = vmatprep.subr.bf16.mxu0 %v1419_v7 }
  0x22   :  { %1182 = vmatmul.mubr.msk.f32.gmra.mrb[12].mxu0 %vm68_vm0, %v39_v45  ;;  %1206 = vmatmul.mubr.msk.f32.gmra.mrb[12].mxu1 %vm68_vm0, %v55_v46 }
  0x23   :  { %1184 = vmatprep.mubr.msk.f32.mxu0 %vm68_vm0, %v40_v47  ;;  %1208 = vmatprep.mubr.msk.f32.mxu1 %vm68_vm0, %v56_v48 }
  0x24   :  { %1400 = vmatprep.subr.bf16.mxu1 %v1399_v56  ;;  %1422 = vmatpush3.bf16.msra.mxu0 %v1419_v7 }
  0x25   :  { %1402 = vmatpush3.bf16.msra.mxu1 %v1399_v56  ;;  %1424 = vmatprep.subr.bf16.mxu0 %v1423_v10 }
  0x26   :  { %1185 = vmatmul.mubr.msk.f32.gmra.mrb[14].mxu0 %vm68_vm0, %v41_v49  ;;  %1209 = vmatmul.mubr.msk.f32.gmra.mrb[14].mxu1 %vm68_vm0, %v57_v50 }
  0x27   :  { %1404 = vmatprep.subr.bf16.mxu1 %v1403_v59 }
  0x28   :  { %1426 = vmatpush3.bf16.msra.mxu0 %v1423_v10 }
  0x29   :  { %1406 = vmatpush3.bf16.msra.mxu1 %v1403_v59 }
  0xdd   :  { %v1165_v12 = vpop.f32.mrb[0].mxu0  ;;  %v1831_v13 = vpop.f32.mrb[0].mxu1 }
  0xde   :  { %v241_v14 = vadd.f32 %v1165_v12, %v1829_v11  ;;  %v235_v15 = vpop.f32.mrb[1].mxu0  ;;  %v1834_v16 = vpop.f32.mrb[1].mxu1  ;;  %v321_v8 = vadd.f32 %v1831_v13, %v1829_v11 }
  0xdf   :  { %v236_v17 = vadd.f32 %v1829_v11, %v235_v15  ;;  %v316_v62 = vadd.f32 %v1829_v11, %v1834_v16 }
  0xe1   :  { %1443 = vtanh.f32 %v236_v17  ;;  %v1168_v18 = vpop.f32.mrb[2].mxu0  ;;  %v1837_v19 = vpop.f32.mrb[2].mxu1 }
  0xe2   :  { %1445 = vtanh.f32 %v241_v14  ;;  %v251_v20 = vadd.f32 %v1168_v18, %v1829_v11  ;;  %v245_v21 = vpop.f32.mrb[3].mxu0  ;;  %v1840_v22 = vpop.f32.mrb[3].mxu1  ;;  %v331_v14 = vadd.f32 %v1837_v19, %v1829_v11 }
  0xe3   :  { %v246_v23 = vadd.f32 %v1829_v11, %v245_v21  ;;  %v326_v7 = vadd.f32 %v1829_v11, %v1840_v22 }
  0xe5   :  { %1447 = vtanh.f32 %v246_v23  ;;  %v1171_v24 = vpop.f32.mrb[4].mxu0  ;;  %v1843_v25 = vpop.f32.mrb[4].mxu1 }
  0xe6   :  { %1449 = vtanh.f32 %v251_v20  ;;  %v261_v26 = vadd.f32 %v1171_v24, %v1829_v11  ;;  %v255_v27 = vpop.f32.mrb[5].mxu0  ;;  %v1846_v28 = vpop.f32.mrb[5].mxu1  ;;  %v341_v18 = vadd.f32 %v1843_v25, %v1829_v11 }
  0xe7   :  { %v256_v29 = vadd.f32 %v1829_v11, %v255_v27  ;;  %v336_v12 = vadd.f32 %v1829_v11, %v1846_v28 }
  0xe9   :  { %1451 = vtanh.f32 %v256_v29  ;;  %v1174_v30 = vpop.f32.mrb[6].mxu0  ;;  %v1849_v31 = vpop.f32.mrb[6].mxu1 }
  0xea   :  { %1453 = vtanh.f32 %v261_v26  ;;  %v271_v32 = vadd.f32 %v1174_v30, %v1829_v11  ;;  %v265_v33 = vpop.f32.mrb[7].mxu0  ;;  %v1852_v34 = vpop.f32.mrb[7].mxu1  ;;  %v351_v22 = vadd.f32 %v1849_v31, %v1829_v11 }
  0xeb   :  { %v1444_v35 = vpop.eup %1443  ;;  %v266_v36 = vadd.f32 %v1829_v11, %v265_v33  ;;  %v346_v13 = vadd.f32 %v1829_v11, %v1852_v34 }
  0xec   :  { %v1446_v37 = vpop.eup %1445  ;;  %1243 = vmatprep.mubr.f32.mxu1 %v1444_v35 }
  0xed   :  { %1455 = vtanh.f32 %v266_v36  ;;  %v1177_v38 = vpop.f32.mrb[8].mxu0  ;;  %1244 = vmatmul.mubr.f32.vlgmr.msra.gmra.mrb[16].mxu1 %v1446_v37  ;;  %v1855_v39 = vpop.f32.mrb[8].mxu1 }
  0xee   :  { %1457 = vtanh.f32 %v271_v32  ;;  %v281_v40 = vadd.f32 %v1177_v38, %v1829_v11  ;;  %v275_v41 = vpop.f32.mrb[9].mxu0  ;;  %v1858_v42 = vpop.f32.mrb[9].mxu1  ;;  %v361_v26 = vadd.f32 %v1855_v39, %v1829_v11 }
  0xef   :  { %v1448_v43 = vpop.eup %1447  ;;  %v276_v44 = vadd.f32 %v1829_v11, %v275_v41  ;;  %v356_v19 = vadd.f32 %v1829_v11, %v1858_v42 }
  0xf0   :  { %v1450_v45 = vpop.eup %1449  ;;  %1246 = vmatprep.mubr.f32.mxu1 %v1448_v43 }
  0xf1   :  { %1459 = vtanh.f32 %v276_v44  ;;  %v1180_v46 = vpop.f32.mrb[10].mxu0  ;;  %1247 = vmatmul.mubr.f32.gmra.mrb[18].mxu1 %v1450_v45  ;;  %v1861_v47 = vpop.f32.mrb[10].mxu1  ;;  %v717_v45 = vld [vmem:[%s2096_s5 + $0x58] sm:$0xff] }
  0xf2   :  { %1461 = vtanh.f32 %v281_v40  ;;  %v291_v48 = vadd.f32 %v1180_v46, %v1829_v11  ;;  %v285_v49 = vpop.f32.mrb[11].mxu0  ;;  %v1864_v50 = vpop.f32.mrb[11].mxu1  ;;  %v371_v30 = vadd.f32 %v1861_v47, %v1829_v11  ;;  %v718_v47 = vld [vmem:[%s2096_s5 + $0x60] sm:$0xff] }
  0xf3   :  { %v1452_v51 = vpop.eup %1451  ;;  %v286_v52 = vadd.f32 %v1829_v11, %v285_v49  ;;  %v366_v25 = vadd.f32 %v1829_v11, %v1864_v50  ;;  %v720_v50 = vld [vmem:[%s2096_s5 + $0x70] sm:$0xff] }
  0xf4   :  { %v1454_v53 = vpop.eup %1453  ;;  %1249 = vmatprep.mubr.f32.mxu1 %v1452_v51  ;;  %v721_v51 = vld [vmem:[%s2096_s5 + $0x78] sm:$0xff] }
  0xf5   :  { %1463 = vtanh.f32 %v286_v52  ;;  %v1183_v54 = vpop.f32.mrb[12].mxu0  ;;  %1250 = vmatmul.mubr.f32.gmra.mrb[20].mxu1 %v1454_v53  ;;  %v1867_v55 = vpop.f32.mrb[12].mxu1  ;;  %v1435_v52 = vpack.c.bf16 %v721_v51, %v720_v50  ;;  %v1926_v53 = vld [vmem:[%s2098_s4] ss:$0 sm:$0xff] }
  0xf6   :  { %1465 = vtanh.f32 %v291_v48  ;;  %v301_v56 = vadd.f32 %v1183_v54, %v1829_v11  ;;  %v295_v57 = vpop.f32.mrb[13].mxu0  ;;  %v375_v58 = vpop.f32.mrb[13].mxu1  ;;  %v381_v34 = vadd.f32 %v1867_v55, %v1829_v11  ;;  %v719_v48 = vld [vmem:[%s2096_s5 + $0x68] sm:$0xff] }
  0xf7   :  { %v1456_v59 = vpop.eup %1455  ;;  %v296_v60 = vadd.f32 %v1829_v11, %v295_v57  ;;  %v376_v29 = vadd.f32 %v1829_v11, %v375_v58  ;;  %v1431_v49 = vpack.c.bf16 %v719_v48, %v718_v47 }
  0xf8   :  { %v1458_v61 = vpop.eup %1457  ;;  %1252 = vmatprep.mubr.f32.mxu1 %v1456_v59 }
  0xf9   :  { %1467 = vtanh.f32 %v296_v60  ;;  %v1186_v63 = vpop.f32.mrb[14].mxu0  ;;  %1253 = vmatmul.mubr.f32.gmra.mrb[22].mxu1 %v1458_v61  ;;  %v1873_v0 = vpop.f32.mrb[14].mxu1 }
  0xfa   :  { %1469 = vtanh.f32 %v301_v56  ;;  %v311_v1 = vadd.f32 %v1186_v63, %v1829_v11  ;;  %v305_v2 = vpop.f32.mrb[15].mxu0  ;;  %v385_v3 = vpop.f32.mrb[15].mxu1  ;;  %v391_v37 = vadd.f32 %v1873_v0, %v1829_v11 }
  0xfb   :  { %v1460_v4 = vpop.eup %1459  ;;  %v306_v5 = vadd.f32 %v1829_v11, %v305_v2  ;;  %1471 = vtanh.f32 %v316_v62  ;;  %v386_v33 = vadd.f32 %v1829_v11, %v385_v3  ;;  %v716_v11 = vld [vmem:[%s2096_s5 + $0x50] sm:$0xff] }
  0xfc   :  { %v1462_v6 = vpop.eup %1461  ;;  %1255 = vmatprep.mubr.f32.mxu1 %v1460_v4  ;;  %v1427_v46 = vpack.c.bf16 %v717_v45, %v716_v11 }
  0xfd   :  { %1473 = vtanh.f32 %v306_v5  ;;  %1256 = vmatmul.mubr.f32.gmra.mrb[24].mxu1 %v1462_v6 }
  0xfe   :  { %1475 = vtanh.f32 %v311_v1  ;;  %1428 = vmatprep.subr.bf16.mxu0 %v1427_v46 }
  0xff   :  { %v1464_v9 = vpop.eup %1463  ;;  %1477 = vtanh.f32 %v326_v7  ;;  %1430 = vmatpush3.bf16.msra.mxu0 %v1427_v46 }
 0x100   :  { %v1466_v10 = vpop.eup %1465  ;;  %1258 = vmatprep.mubr.f32.mxu1 %v1464_v9  ;;  %1479 = vtanh.f32 %v321_v8  ;;  %1432 = vmatprep.subr.bf16.mxu0 %v1431_v49 }
 0x101   :  { %1259 = vmatmul.mubr.f32.gmra.mrb[26].mxu1 %v1466_v10  ;;  %1481 = vtanh.f32 %v336_v12 }
 0x102   :  { %1483 = vtanh.f32 %v331_v14 }
 0x103   :  { %v1468_v15 = vpop.eup %1467  ;;  %1485 = vtanh.f32 %v346_v13  ;;  %1434 = vmatpush3.bf16.msra.mxu0 %v1431_v49 }
 0x104   :  { %v1470_v16 = vpop.eup %1469  ;;  %1261 = vmatprep.mubr.f32.mxu1 %v1468_v15  ;;  %1487 = vtanh.f32 %v341_v18  ;;  %1436 = vmatprep.subr.bf16.mxu0 %v1435_v52 }
 0x105   :  { %1262 = vmatmul.mubr.f32.gmra.mrb[28].mxu1 %v1470_v16  ;;  %v1472_v17 = vpop.eup %1471  ;;  %1489 = vtanh.f32 %v356_v19 }
 0x106   :  { %1491 = vtanh.f32 %v351_v22 }
 0x107   :  { %v1474_v20 = vpop.eup %1473  ;;  %1493 = vtanh.f32 %v366_v25  ;;  %1438 = vmatpush3.bf16.msra.mxu0 %v1435_v52 }
 0x108   :  { %v1476_v21 = vpop.eup %1475  ;;  %1264 = vmatprep.mubr.f32.mxu1 %v1474_v20  ;;  %1495 = vtanh.f32 %v361_v26 }
 0x109   :  { %1265 = vmatmul.mubr.f32.gmra.mrb[30].mxu1 %v1476_v21  ;;  %v1478_v23 = vpop.eup %1477  ;;  %1497 = vtanh.f32 %v376_v29 }
 0x10a   :  { %1267 = vmatprep.mubr.f32.mxu1 %v1472_v17  ;;  %v1480_v24 = vpop.eup %1479  ;;  %1499 = vtanh.f32 %v371_v30 }
 0x10b   :  { %v1482_v27 = vpop.eup %1481  ;;  %1501 = vtanh.f32 %v386_v33 }
 0x10c   :  { %v1484_v28 = vpop.eup %1483  ;;  %1503 = vtanh.f32 %v381_v34 }
 0x10d   :  { %1268 = vmatmul.mubr.f32.gmra.mrb[32].mxu1 %v1480_v24  ;;  %v1486_v31 = vpop.eup %1485  ;;  %1505 = vtanh.f32 %v391_v37 }
 0x10e   :  { %1270 = vmatprep.mubr.f32.mxu1 %v1478_v23  ;;  %v1488_v32 = vpop.eup %1487 }
 0x10f   :  { %v1490_v35 = vpop.eup %1489 }
 0x110   :  { %v1492_v36 = vpop.eup %1491 }
 0x111   :  { %1271 = vmatmul.mubr.f32.gmra.mrb[34].mxu1 %v1484_v28  ;;  %v1494_v38 = vpop.eup %1493 }
 0x112   :  { %1273 = vmatprep.mubr.f32.mxu1 %v1482_v27  ;;  %v1496_v39 = vpop.eup %1495 }
 0x113   :  { %v1498_v40 = vpop.eup %1497 }
 0x114   :  { %v1500_v41 = vpop.eup %1499 }
 0x115   :  { %1274 = vmatmul.mubr.f32.gmra.mrb[36].mxu1 %v1488_v32  ;;  %v1502_v42 = vpop.eup %1501 }
 0x116   :  { %1276 = vmatprep.mubr.f32.mxu1 %v1486_v31  ;;  %v1504_v43 = vpop.eup %1503 }
 0x117   :  { %v1506_v44 = vpop.eup %1505 }
 0x119   :  { %1277 = vmatmul.mubr.f32.gmra.mrb[38].mxu1 %v1492_v36 }
 0x11a   :  { %1279 = vmatprep.mubr.f32.mxu1 %v1490_v35 }
 0x11d   :  { %1280 = vmatmul.mubr.f32.gmra.mrb[40].mxu1 %v1496_v39 }
 0x11e   :  { %1282 = vmatprep.mubr.f32.mxu1 %v1494_v38 }
 0x121   :  { %1283 = vmatmul.mubr.f32.gmra.mrb[42].mxu1 %v1500_v41 }
 0x122   :  { %1285 = vmatprep.mubr.f32.mxu1 %v1498_v40 }
 0x125   :  { %1286 = vmatmul.mubr.f32.gmra.mrb[44].mxu1 %v1504_v43 }
 0x126   :  { %1288 = vmatprep.mubr.f32.mxu1 %v1502_v42 }
 0x129   :  { %1289 = vmatmul.mubr.f32.gmra.mrb[46].mxu1 %v1506_v44 }
 0x1c0   :  { %v1245_v54 = vpop.f32.mrb[16].mxu1 }
 0x1c1   :  { %v521_v55 = vadd.f32 %v1245_v54, %v1926_v53  ;;  %v515_v56 = vpop.f32.mrb[17].mxu1 }
 0x1c2   :  { %v516_v57 = vadd.f32 %v1926_v53, %v515_v56 }
 0x1c4   :  { %1507 = vtanh.f32 %v516_v57  ;;  %v1248_v58 = vpop.f32.mrb[18].mxu1 }
 0x1c5   :  { %1509 = vtanh.f32 %v521_v55  ;;  %v531_v59 = vadd.f32 %v1248_v58, %v1926_v53  ;;  %v525_v60 = vpop.f32.mrb[19].mxu1 }
 0x1c6   :  { %v526_v61 = vadd.f32 %v1926_v53, %v525_v60 }
 0x1c8   :  { %1511 = vtanh.f32 %v526_v61  ;;  %v1251_v62 = vpop.f32.mrb[20].mxu1 }
 0x1c9   :  { %1513 = vtanh.f32 %v531_v59  ;;  %v541_v63 = vadd.f32 %v1251_v62, %v1926_v53  ;;  %v535_v0 = vpop.f32.mrb[21].mxu1 }
 0x1ca   :  { %v536_v1 = vadd.f32 %v1926_v53, %v535_v0 }
 0x1cc   :  { %1515 = vtanh.f32 %v536_v1  ;;  %v1254_v2 = vpop.f32.mrb[22].mxu1 }
 0x1cd   :  { %1517 = vtanh.f32 %v541_v63  ;;  %v551_v3 = vadd.f32 %v1254_v2, %v1926_v53  ;;  %v545_v4 = vpop.f32.mrb[23].mxu1 }
 0x1ce   :  { %v1508_v5 = vpop.eup %1507  ;;  %v546_v6 = vadd.f32 %v1926_v53, %v545_v4 }
 0x1cf   :  { %v1510_v7 = vpop.eup %1509  ;;  %1323 = vmatprep.mubr.f32.mxu0 %v1508_v5 }
 0x1d0   :  { %1519 = vtanh.f32 %v546_v6  ;;  %v1257_v8 = vpop.f32.mrb[24].mxu1  ;;  %1324 = vmatmul.mubr.f32.vlgmr.msra.gmra.mrb[16].mxu0 %v1510_v7 }
 0x1d1   :  { %1521 = vtanh.f32 %v551_v3  ;;  %v561_v9 = vadd.f32 %v1257_v8, %v1926_v53  ;;  %v555_v10 = vpop.f32.mrb[25].mxu1 }
 0x1d2   :  { %v1512_v12 = vpop.eup %1511  ;;  %v556_v14 = vadd.f32 %v1926_v53, %v555_v10 }
 0x1d3   :  { %v1514_v15 = vpop.eup %1513  ;;  %1326 = vmatprep.mubr.f32.mxu0 %v1512_v12 }
 0x1d4   :  { %1523 = vtanh.f32 %v556_v14  ;;  %v1260_v16 = vpop.f32.mrb[26].mxu1  ;;  %1327 = vmatmul.mubr.f32.gmra.mrb[18].mxu0 %v1514_v15 }
 0x1d5   :  { %1525 = vtanh.f32 %v561_v9  ;;  %v571_v13 = vadd.f32 %v1260_v16, %v1926_v53  ;;  %v565_v17 = vpop.f32.mrb[27].mxu1 }
 0x1d6   :  { %v1516_v18 = vpop.eup %1515  ;;  %v566_v20 = vadd.f32 %v1926_v53, %v565_v17 }
 0x1d7   :  { %v1518_v21 = vpop.eup %1517  ;;  %1329 = vmatprep.mubr.f32.mxu0 %v1516_v18 }
 0x1d8   :  { %1527 = vtanh.f32 %v566_v20  ;;  %v1263_v19 = vpop.f32.mrb[28].mxu1  ;;  %1330 = vmatmul.mubr.f32.gmra.mrb[20].mxu0 %v1518_v21 }
 0x1d9   :  { %1529 = vtanh.f32 %v571_v13  ;;  %v581_v22 = vadd.f32 %v1263_v19, %v1926_v53  ;;  %v575_v23 = vpop.f32.mrb[29].mxu1 }
 0x1da   :  { %v1520_v24 = vpop.eup %1519  ;;  %v576_v25 = vadd.f32 %v1926_v53, %v575_v23 }
 0x1db   :  { %v1522_v26 = vpop.eup %1521  ;;  %1332 = vmatprep.mubr.f32.mxu0 %v1520_v24 }
 0x1dc   :  { %1531 = vtanh.f32 %v576_v25  ;;  %v1266_v27 = vpop.f32.mrb[30].mxu1  ;;  %1333 = vmatmul.mubr.f32.gmra.mrb[22].mxu0 %v1522_v26 }
 0x1dd   :  { %1533 = vtanh.f32 %v581_v22  ;;  %v591_v28 = vadd.f32 %v1266_v27, %v1926_v53  ;;  %v585_v29 = vpop.f32.mrb[31].mxu1 }
 0x1de   :  { %v1524_v30 = vpop.eup %1523  ;;  %v586_v31 = vadd.f32 %v1926_v53, %v585_v29 }
 0x1df   :  { %v1526_v32 = vpop.eup %1525  ;;  %1335 = vmatprep.mubr.f32.mxu0 %v1524_v30 }
 0x1e0   :  { %1535 = vtanh.f32 %v586_v31  ;;  %v1269_v33 = vpop.f32.mrb[32].mxu1  ;;  %1336 = vmatmul.mubr.f32.gmra.mrb[24].mxu0 %v1526_v32 }
 0x1e1   :  { %1537 = vtanh.f32 %v591_v28  ;;  %v601_v34 = vadd.f32 %v1269_v33, %v1926_v53  ;;  %v595_v35 = vpop.f32.mrb[33].mxu1 }
 0x1e2   :  { %v1528_v36 = vpop.eup %1527  ;;  %v596_v37 = vadd.f32 %v1926_v53, %v595_v35 }
 0x1e3   :  { %v1530_v38 = vpop.eup %1529  ;;  %1338 = vmatprep.mubr.f32.mxu0 %v1528_v36 }
 0x1e4   :  { %1539 = vtanh.f32 %v596_v37  ;;  %v1272_v39 = vpop.f32.mrb[34].mxu1  ;;  %1339 = vmatmul.mubr.f32.gmra.mrb[26].mxu0 %v1530_v38 }
 0x1e5   :  { %1541 = vtanh.f32 %v601_v34  ;;  %v611_v40 = vadd.f32 %v1272_v39, %v1926_v53  ;;  %v605_v41 = vpop.f32.mrb[35].mxu1 }
 0x1e6   :  { %v1532_v42 = vpop.eup %1531  ;;  %v606_v43 = vadd.f32 %v1926_v53, %v605_v41 }
 0x1e7   :  { %v1534_v44 = vpop.eup %1533  ;;  %1341 = vmatprep.mubr.f32.mxu0 %v1532_v42 }
 0x1e8   :  { %1543 = vtanh.f32 %v606_v43  ;;  %v1275_v11 = vpop.f32.mrb[36].mxu1  ;;  %1342 = vmatmul.mubr.f32.gmra.mrb[28].mxu0 %v1534_v44 }
 0x1e9   :  { %1545 = vtanh.f32 %v611_v40  ;;  %v621_v45 = vadd.f32 %v1275_v11, %v1926_v53  ;;  %v615_v46 = vpop.f32.mrb[37].mxu1 }
 0x1ea   :  { %v1536_v47 = vpop.eup %1535  ;;  %v616_v48 = vadd.f32 %v1926_v53, %v615_v46 }
 0x1eb   :  { %v1538_v49 = vpop.eup %1537  ;;  %1344 = vmatprep.mubr.f32.mxu0 %v1536_v47 }
 0x1ec   :  { %1547 = vtanh.f32 %v616_v48  ;;  %v1278_v50 = vpop.f32.mrb[38].mxu1  ;;  %1345 = vmatmul.mubr.f32.gmra.mrb[30].mxu0 %v1538_v49 }
 0x1ed   :  { %1549 = vtanh.f32 %v621_v45  ;;  %v631_v51 = vadd.f32 %v1278_v50, %v1926_v53  ;;  %v625_v52 = vpop.f32.mrb[39].mxu1 }
 0x1ee   :  { %v1540_v54 = vpop.eup %1539  ;;  %v626_v55 = vadd.f32 %v1926_v53, %v625_v52 }
 0x1ef   :  { %v1542_v56 = vpop.eup %1541  ;;  %1347 = vmatprep.mubr.f32.mxu0 %v1540_v54 }
 0x1f0   :  { %1551 = vtanh.f32 %v626_v55  ;;  %v1281_v57 = vpop.f32.mrb[40].mxu1  ;;  %1348 = vmatmul.mubr.f32.gmra.mrb[32].mxu0 %v1542_v56 }
 0x1f1   :  { %1553 = vtanh.f32 %v631_v51  ;;  %v641_v58 = vadd.f32 %v1281_v57, %v1926_v53  ;;  %v635_v59 = vpop.f32.mrb[41].mxu1 }
 0x1f2   :  { %v1544_v60 = vpop.eup %1543  ;;  %v636_v61 = vadd.f32 %v1926_v53, %v635_v59 }
 0x1f3   :  { %v1546_v62 = vpop.eup %1545  ;;  %1350 = vmatprep.mubr.f32.mxu0 %v1544_v60 }
 0x1f4   :  { %1555 = vtanh.f32 %v636_v61  ;;  %v1284_v63 = vpop.f32.mrb[42].mxu1  ;;  %1351 = vmatmul.mubr.f32.gmra.mrb[34].mxu0 %v1546_v62 }
 0x1f5   :  { %1557 = vtanh.f32 %v641_v58  ;;  %v651_v0 = vadd.f32 %v1284_v63, %v1926_v53  ;;  %v645_v1 = vpop.f32.mrb[43].mxu1 }
 0x1f6   :  { %v1548_v2 = vpop.eup %1547  ;;  %v646_v3 = vadd.f32 %v1926_v53, %v645_v1 }
 0x1f7   :  { %v1550_v4 = vpop.eup %1549  ;;  %1353 = vmatprep.mubr.f32.mxu0 %v1548_v2 }
 0x1f8   :  { %1559 = vtanh.f32 %v646_v3  ;;  %v1287_v5 = vpop.f32.mrb[44].mxu1  ;;  %1354 = vmatmul.mubr.f32.gmra.mrb[36].mxu0 %v1550_v4 }
 0x1f9   :  { %1561 = vtanh.f32 %v651_v0  ;;  %v661_v6 = vadd.f32 %v1287_v5, %v1926_v53  ;;  %v655_v7 = vpop.f32.mrb[45].mxu1 }
 0x1fa   :  { %v1552_v8 = vpop.eup %1551  ;;  %v656_v9 = vadd.f32 %v1926_v53, %v655_v7 }
 0x1fb   :  { %v1554_v10 = vpop.eup %1553  ;;  %1356 = vmatprep.mubr.f32.mxu0 %v1552_v8 }
 0x1fc   :  { %1563 = vtanh.f32 %v656_v9  ;;  %v1290_v12 = vpop.f32.mrb[46].mxu1  ;;  %1357 = vmatmul.mubr.f32.gmra.mrb[38].mxu0 %v1554_v10 }
 0x1fd   :  { %1565 = vtanh.f32 %v661_v6  ;;  %v671_v14 = vadd.f32 %v1290_v12, %v1926_v53  ;;  %v665_v15 = vpop.f32.mrb[47].mxu1 }
 0x1fe   :  { %v1556_v16 = vpop.eup %1555  ;;  %v666_v13 = vadd.f32 %v1926_v53, %v665_v15  ;;  %v1963_v53 = vld [vmem:[%s2099_s6] ss:$0 sm:$0xff] }
 0x1ff   :  { %v1558_v17 = vpop.eup %1557  ;;  %1359 = vmatprep.mubr.f32.mxu0 %v1556_v16 }
 0x200   :  { %1567 = vtanh.f32 %v666_v13  ;;  %1360 = vmatmul.mubr.f32.gmra.mrb[40].mxu0 %v1558_v17 }
 0x201   :  { %1569 = vtanh.f32 %v671_v14 }
 0x202   :  { %v1560_v18 = vpop.eup %1559 }
 0x203   :  { %v1562_v20 = vpop.eup %1561  ;;  %1362 = vmatprep.mubr.f32.mxu0 %v1560_v18 }
 0x204   :  { %1363 = vmatmul.mubr.f32.gmra.mrb[42].mxu0 %v1562_v20 }
 0x206   :  { %v1564_v21 = vpop.eup %1563 }
 0x207   :  { %v1566_v19 = vpop.eup %1565  ;;  %1365 = vmatprep.mubr.f32.mxu0 %v1564_v21 }
 0x208   :  { %1366 = vmatmul.mubr.f32.gmra.mrb[44].mxu0 %v1566_v19 }
 0x20a   :  { %v1568_v22 = vpop.eup %1567 }
 0x20b   :  { %v1570_v23 = vpop.eup %1569  ;;  %1368 = vmatprep.mubr.f32.mxu0 %v1568_v22 }
 0x20c   :  { %1369 = vmatmul.mubr.f32.gmra.mrb[46].mxu0 %v1570_v23 }
 0x2a3   :  { %v1325_v24 = vpop.f32.mrb[16].mxu0 }
 0x2a4   :  { %v801_v25 = vadd.f32 %v1325_v24, %v1963_v53  ;;  %v795_v26 = vpop.f32.mrb[17].mxu0 }
 0x2a5   :  { %v796_v27 = vadd.f32 %v1963_v53, %v795_v26 }
 0x2a6   :  { %955 = vst [vmem:[%s2100_s7 + $0x8] sm:$0xff] %v801_v25 }
 0x2a7   :  { %954 = vst [vmem:[%s2100_s7] sm:$0xff] %v796_v27  ;;  %v1328_v28 = vpop.f32.mrb[18].mxu0 }
 0x2a8   :  { %v811_v29 = vadd.f32 %v1328_v28, %v1963_v53  ;;  %v805_v30 = vpop.f32.mrb[19].mxu0 }
 0x2a9   :  { %v806_v31 = vadd.f32 %v1963_v53, %v805_v30 }
 0x2aa   :  { %957 = vst [vmem:[%s2100_s7 + $0x18] sm:$0xff] %v811_v29 }
 0x2ab   :  { %956 = vst [vmem:[%s2100_s7 + $0x10] sm:$0xff] %v806_v31  ;;  %v1331_v32 = vpop.f32.mrb[20].mxu0 }
 0x2ac   :  { %v821_v33 = vadd.f32 %v1331_v32, %v1963_v53  ;;  %v815_v34 = vpop.f32.mrb[21].mxu0 }
 0x2ad   :  { %v816_v35 = vadd.f32 %v1963_v53, %v815_v34 }
 0x2ae   :  { %959 = vst [vmem:[%s2100_s7 + $0x28] sm:$0xff] %v821_v33 }
 0x2af   :  { %958 = vst [vmem:[%s2100_s7 + $0x20] sm:$0xff] %v816_v35  ;;  %v1334_v36 = vpop.f32.mrb[22].mxu0 }
 0x2b0   :  { %v831_v37 = vadd.f32 %v1334_v36, %v1963_v53  ;;  %v825_v38 = vpop.f32.mrb[23].mxu0 }
 0x2b1   :  { %v826_v39 = vadd.f32 %v1963_v53, %v825_v38 }
 0x2b2   :  { %961 = vst [vmem:[%s2100_s7 + $0x38] sm:$0xff] %v831_v37 }
 0x2b3   :  { %960 = vst [vmem:[%s2100_s7 + $0x30] sm:$0xff] %v826_v39  ;;  %v1337_v40 = vpop.f32.mrb[24].mxu0 }
 0x2b4   :  { %v841_v41 = vadd.f32 %v1337_v40, %v1963_v53  ;;  %v835_v42 = vpop.f32.mrb[25].mxu0 }
 0x2b5   :  { %v836_v43 = vadd.f32 %v1963_v53, %v835_v42 }
 0x2b6   :  { %963 = vst [vmem:[%s2100_s7 + $0x48] sm:$0xff] %v841_v41 }
 0x2b7   :  { %962 = vst [vmem:[%s2100_s7 + $0x40] sm:$0xff] %v836_v43  ;;  %v1340_v44 = vpop.f32.mrb[26].mxu0 }
 0x2b8   :  { %v851_v11 = vadd.f32 %v1340_v44, %v1963_v53  ;;  %v845_v45 = vpop.f32.mrb[27].mxu0 }
 0x2b9   :  { %v846_v46 = vadd.f32 %v1963_v53, %v845_v45 }
 0x2ba   :  { %965 = vst [vmem:[%s2100_s7 + $0x58] sm:$0xff] %v851_v11 }
 0x2bb   :  { %964 = vst [vmem:[%s2100_s7 + $0x50] sm:$0xff] %v846_v46  ;;  %v1343_v47 = vpop.f32.mrb[28].mxu0 }
 0x2bc   :  { %v861_v48 = vadd.f32 %v1343_v47, %v1963_v53  ;;  %v855_v49 = vpop.f32.mrb[29].mxu0 }
 0x2bd   :  { %v856_v50 = vadd.f32 %v1963_v53, %v855_v49 }
 0x2be   :  { %967 = vst [vmem:[%s2100_s7 + $0x68] sm:$0xff] %v861_v48 }
 0x2bf   :  { %966 = vst [vmem:[%s2100_s7 + $0x60] sm:$0xff] %v856_v50  ;;  %v1346_v51 = vpop.f32.mrb[30].mxu0 }
 0x2c0   :  { %v871_v52 = vadd.f32 %v1346_v51, %v1963_v53  ;;  %v865_v54 = vpop.f32.mrb[31].mxu0 }
 0x2c1   :  { %v866_v55 = vadd.f32 %v1963_v53, %v865_v54 }
 0x2c2   :  { %969 = vst [vmem:[%s2100_s7 + $0x78] sm:$0xff] %v871_v52 }
 0x2c3   :  { %968 = vst [vmem:[%s2100_s7 + $0x70] sm:$0xff] %v866_v55  ;;  %v1349_v56 = vpop.f32.mrb[32].mxu0 }
 0x2c4   :  { %v881_v57 = vadd.f32 %v1349_v56, %v1963_v53  ;;  %v875_v58 = vpop.f32.mrb[33].mxu0 }
 0x2c5   :  { %v876_v59 = vadd.f32 %v1963_v53, %v875_v58 }
 0x2c6   :  { %971 = vst [vmem:[%s2100_s7 + $0x88] sm:$0xff] %v881_v57 }
 0x2c7   :  { %970 = vst [vmem:[%s2100_s7 + $0x80] sm:$0xff] %v876_v59  ;;  %v1352_v60 = vpop.f32.mrb[34].mxu0 }
 0x2c8   :  { %v891_v61 = vadd.f32 %v1352_v60, %v1963_v53  ;;  %v885_v62 = vpop.f32.mrb[35].mxu0 }
 0x2c9   :  { %v886_v63 = vadd.f32 %v1963_v53, %v885_v62 }
 0x2ca   :  { %973 = vst [vmem:[%s2100_s7 + $0x98] sm:$0xff] %v891_v61 }
 0x2cb   :  { %972 = vst [vmem:[%s2100_s7 + $0x90] sm:$0xff] %v886_v63  ;;  %v1355_v0 = vpop.f32.mrb[36].mxu0 }
 0x2cc   :  { %v901_v1 = vadd.f32 %v1355_v0, %v1963_v53  ;;  %v895_v2 = vpop.f32.mrb[37].mxu0 }
 0x2cd   :  { %v896_v3 = vadd.f32 %v1963_v53, %v895_v2 }
 0x2ce   :  { %975 = vst [vmem:[%s2100_s7 + $0xa8] sm:$0xff] %v901_v1 }
 0x2cf   :  { %974 = vst [vmem:[%s2100_s7 + $0xa0] sm:$0xff] %v896_v3  ;;  %v1358_v4 = vpop.f32.mrb[38].mxu0 }
 0x2d0   :  { %v911_v5 = vadd.f32 %v1358_v4, %v1963_v53  ;;  %v905_v6 = vpop.f32.mrb[39].mxu0 }
 0x2d1   :  { %v906_v7 = vadd.f32 %v1963_v53, %v905_v6 }
 0x2d2   :  { %977 = vst [vmem:[%s2100_s7 + $0xb8] sm:$0xff] %v911_v5 }
 0x2d3   :  { %976 = vst [vmem:[%s2100_s7 + $0xb0] sm:$0xff] %v906_v7  ;;  %v1361_v8 = vpop.f32.mrb[40].mxu0 }
 0x2d4   :  { %v921_v9 = vadd.f32 %v1361_v8, %v1963_v53  ;;  %v915_v10 = vpop.f32.mrb[41].mxu0 }
 0x2d5   :  { %v916_v12 = vadd.f32 %v1963_v53, %v915_v10 }
 0x2d6   :  { %979 = vst [vmem:[%s2100_s7 + $0xc8] sm:$0xff] %v921_v9 }
 0x2d7   :  { %978 = vst [vmem:[%s2100_s7 + $0xc0] sm:$0xff] %v916_v12  ;;  %v1364_v14 = vpop.f32.mrb[42].mxu0 }
 0x2d8   :  { %v931_v15 = vadd.f32 %v1364_v14, %v1963_v53  ;;  %v925_v16 = vpop.f32.mrb[43].mxu0 }
 0x2d9   :  { %v926_v13 = vadd.f32 %v1963_v53, %v925_v16 }
 0x2da   :  { %981 = vst [vmem:[%s2100_s7 + $0xd8] sm:$0xff] %v931_v15 }
 0x2db   :  { %980 = vst [vmem:[%s2100_s7 + $0xd0] sm:$0xff] %v926_v13  ;;  %v1367_v17 = vpop.f32.mrb[44].mxu0 }
 0x2dc   :  { %v941_v18 = vadd.f32 %v1367_v17, %v1963_v53  ;;  %v935_v20 = vpop.f32.mrb[45].mxu0 }
 0x2dd   :  { %v936_v21 = vadd.f32 %v1963_v53, %v935_v20 }
 0x2de   :  { %983 = vst [vmem:[%s2100_s7 + $0xe8] sm:$0xff] %v941_v18 }
 0x2df   :  { %982 = vst [vmem:[%s2100_s7 + $0xe0] sm:$0xff] %v936_v21  ;;  %v1370_v19 = vpop.f32.mrb[46].mxu0 }
 0x2e0   :  { %v951_v22 = vadd.f32 %v1370_v19, %v1963_v53  ;;  %v945_v23 = vpop.f32.mrb[47].mxu0 }
 0x2e1   :  { %v946_v24 = vadd.f32 %v1963_v53, %v945_v23 }
 0x2e2   :  { %985 = vst [vmem:[%s2100_s7 + $0xf8] sm:$0xff] %v951_v22 }
 0x2e3   :  { %984 = vst [vmem:[%s2100_s7 + $0xf0] sm:$0xff] %v946_v24 }

</bundles_post_ra>
